<compile_context>
chip_gen: v5e
topology: v5e:2x2
jax: 0.10.0
libtpu: 0.0.40
codegen_flags: <defaults>
</compile_context>

<pallas_src>
import jax
import jax.numpy as jnp
from jax.experimental import pallas as pl
from jax.experimental.pallas import tpu as pltpu

_H1 = 128   # fc1 output width
_H2 = 64    # fc2 output width


def _dqn_kernel(x_ref, w1_ref, b1_ref, w2_ref, b2_ref, w3_ref, b3_ref, o_ref):
    # One batch tile: three MXU matmuls + VPU relu/bias, all f32 accumulation.
    x = x_ref[...]
    h1 = jnp.dot(x, w1_ref[...], preferred_element_type=jnp.float32) + b1_ref[...]
    h1 = jnp.maximum(h1, 0.0)                       # relu(fc1); dropout1 = identity
    h1 = h1.astype(w2_ref.dtype)                    # no-op in f32; bf16 when streaming bf16
    h2 = jnp.dot(h1, w2_ref[...], preferred_element_type=jnp.float32) + b2_ref[...]
    h2 = jnp.maximum(h2, 0.0)                       # relu(fc2); dropout2 = identity
    h2 = h2.astype(w3_ref.dtype)
    out = jnp.dot(h2, w3_ref[...], preferred_element_type=jnp.float32) + b3_ref[...]
    o_ref[...] = out.astype(o_ref.dtype)


def prepare_params(params, dtype=None):
    """One-time parameter prep (hoisted out of the per-call path).

    Optionally casts the weight matrices to `dtype` (e.g. jnp.bfloat16 for
    streaming on v6e/v7x). Biases stay f32 so the f32 accumulate/bias/relu
    path inside the kernel is unchanged."""
    w1, b1, w2, b2, w3, b3 = params
    if dtype is not None:
        w1, w2, w3 = (w.astype(dtype) for w in (w1, w2, w3))
    b1, b2, b3 = (b.astype(jnp.float32) for b in (b1, b2, b3))
    return w1, b1, w2, b2, w3, b3


def select_additional_action_dqn(x, params, *, tile_b=4096):
    """Forward pass. x: any shape whose trailing elements flatten to input_dim.

    For bf16 streaming on v6e/v7x, pass x already as bf16 and params from
    prepare_params(..., dtype=jnp.bfloat16); accumulation stays f32."""
    w1, b1, w2, b2, w3, b3 = params
    input_dim = w1.shape[0]
    output_dim = w3.shape[1]
    out_dtype = jnp.float32

    x2d = x.reshape(-1, input_dim)                  # x.view(-1, input_dim)
    B = x2d.shape[0]
    if B == 0:                                      # empty batch: nothing to launch
        return jnp.zeros((0, output_dim), out_dtype)

    # Only tiny batches (<8 rows) get padded (negligible copy); everything else
    # streams x straight from HBM with no wrapper-side passes.
    B_orig = B
    if B < 8:
        x2d = jnp.pad(x2d, ((0, 8 - B), (0, 0)))
        B = 8

    x_item = jnp.dtype(x2d.dtype).itemsize
    o_item = jnp.dtype(out_dtype).itemsize

    # Batch tile: sublane multiple; shrink if a huge input_dim would blow the
    # scoped VMEM budget (double-buffered tiles + live intermediates).
    tile_b = max(8, (int(tile_b) // 8) * 8)

    def _tile_bytes(t):
        return (2 * t * input_dim * x_item          # double-buffered x tile
                + 2 * t * output_dim * o_item       # double-buffered out tile
                + t * (_H1 + _H2) * 4)              # live f32 intermediates

    while tile_b > 8 and _tile_bytes(tile_b) > (24 << 20):
        tile_b = max(8, ((tile_b // 2) // 8) * 8)

    # Never exceed the (padded-to-8) batch.
    tile_b = min(tile_b, ((B + 7) // 8) * 8)

    # v7x megacore: ensure >=2 balanced grid steps when the batch allows it so
    # dimension_semantics=("parallel",) can shard over both TCs (no-op v5e/v6e).
    if B > 8 and pl.cdiv(B, tile_b) < 2:
        tile_b = max(8, ((pl.cdiv(B, 2) + 7) // 8) * 8)

    grid = (pl.cdiv(B, tile_b),)                    # partial tail block is masked by Pallas

    param_bytes = sum(int(a.size) * jnp.dtype(a.dtype).itemsize
                      for a in (w1, b1, w2, b2, w3, b3))
    vmem_limit = int(min(_tile_bytes(tile_b) + 2 * param_bytes + (8 << 20),
                         60 << 20))                 # stays under v7x 64 MiB physical

    flops = 2 * B * (input_dim * _H1 + _H1 * _H2 + _H2 * output_dim)
    bytes_accessed = (B * input_dim * x_item + B * output_dim * o_item
                      + param_bytes)

    def resident(arr):
        # Full-extent block, same block every grid step -> stays VMEM-resident.
        return pl.BlockSpec(arr.shape, lambda i: (0, 0))

    out = pl.pallas_call(
        _dqn_kernel,
        out_shape=jax.ShapeDtypeStruct((B, output_dim), out_dtype),
        grid=grid,
        in_specs=[
            pl.BlockSpec((tile_b, input_dim), lambda i: (i, 0)),   # streamed x
            resident(w1), resident(b1),
            resident(w2), resident(b2),
            resident(w3), resident(b3),
        ],
        out_specs=pl.BlockSpec((tile_b, output_dim), lambda i: (i, 0)),
        compiler_params=pltpu.CompilerParams(
            dimension_semantics=("parallel",),      # shards batch over 2 TCs on v7x
            vmem_limit_bytes=vmem_limit,
        ),
        cost_estimate=pl.CostEstimate(
            flops=flops, transcendentals=0, bytes_accessed=bytes_accessed),
    )(x2d, w1, b1, w2, b2, w3, b3)

    if B_orig != B:
        out = out[:B_orig]
    return out


def init_params(key, input_dim, output_dim):
    """Deterministic parameter init (PyTorch Linear-style uniform bounds)."""
    def linear(key, fan_in, fan_out):
        k_w, k_b = jax.random.split(key)
        bound = 1.0 / (fan_in ** 0.5)
        # stored as [in, out] (already transposed relative to torch's [out, in])
        w = jax.random.uniform(k_w, (fan_in, fan_out), jnp.float32, -bound, bound)
        b = jax.random.uniform(k_b, (1, fan_out), jnp.float32, -bound, bound)
        return w, b

    k1, k2, k3 = jax.random.split(key, 3)
    w1, b1 = linear(k1, input_dim, 128)
    w2, b2 = linear(k2, 128, 64)
    w3, b3 = linear(k3, 64, output_dim)
    return w1, b1, w2, b2, w3, b3


def _reference(x, params):
    w1, b1, w2, b2, w3, b3 = params
    x = x.reshape(-1, w1.shape[0]).astype(jnp.float32)
    h1 = jnp.maximum(x @ w1 + b1, 0.0)
    h2 = jnp.maximum(h1 @ w2 + b2, 0.0)
    return h2 @ w3 + b3


if __name__ == "__main__":
    key = jax.random.PRNGKey(0)
    k_x, k_p, k_x2 = jax.random.split(key, 3)

    batch = 2
    input_dim = 32
    output_dim = 8

    params_f32 = prepare_params(init_params(k_p, input_dim, output_dim))

    # Small batch (padded internally to one 8-row tile).
    x = jax.random.normal(k_x, (batch, input_dim), jnp.float32)
    out = jax.block_until_ready(select_additional_action_dqn(x, params_f32))
    ref = _reference(x, params_f32)
    assert out.shape == (batch, output_dim)
    assert jnp.allclose(out, ref, atol=1e-5, rtol=1e-5)

    # Larger batch: multi-step grid + masked partial tail tile (300 = 2*128 + 44).
    x_big = jax.random.normal(k_x2, (300, input_dim), jnp.float32)
    out_big = jax.block_until_ready(
        select_additional_action_dqn(x_big, params_f32, tile_b=128))
    ref_big = _reference(x_big, params_f32)
    assert out_big.shape == (300, output_dim)
    assert jnp.allclose(out_big, ref_big, atol=1e-5, rtol=1e-5)

    # bf16 streaming path (v6e/v7x): x cast upstream, params prepared once,
    # f32 accumulation inside the kernel; looser tolerance for bf16 rounding.
    params_bf16 = prepare_params(init_params(k_p, input_dim, output_dim),
                                 dtype=jnp.bfloat16)
    out_bf16 = jax.block_until_ready(
        select_additional_action_dqn(x_big.astype(jnp.bfloat16), params_bf16))
    assert out_bf16.shape == (300, output_dim)
    assert jnp.allclose(out_bf16, ref_big, atol=1e-1, rtol=1e-1)

    print("KERNEL_OK")
</pallas_src>

<mosaic_0001>
module attributes {stable_mosaic.version = 11 : i64} {
  func.func @_dqn_kernel(%arg0: i32, %arg1: memref<8x32xf32, #tpu.memory_space<vmem>>, %arg2: memref<32x128xf32, #tpu.memory_space<vmem>>, %arg3: memref<1x128xf32, #tpu.memory_space<vmem>>, %arg4: memref<128x64xf32, #tpu.memory_space<vmem>>, %arg5: memref<1x64xf32, #tpu.memory_space<vmem>>, %arg6: memref<64x8xf32, #tpu.memory_space<vmem>>, %arg7: memref<1x8xf32, #tpu.memory_space<vmem>>, %arg8: memref<8x8xf32, #tpu.memory_space<vmem>>) attributes {dimension_semantics = [#tpu.dimension_semantics<parallel>], iteration_bounds = array<i64: 1>, scalar_prefetch = 0 : i64, scratch_operands = 0 : i64, tpu.core_type = #tpu.core_type<tc>, window_params = [{transform_indices = @transform_0, window_bounds = array<i64: 8, 32>}, {pipeline_mode = #tpu.pipeline_mode<synchronous>, transform_indices = @transform_1, window_bounds = array<i64: 32, 128>}, {pipeline_mode = #tpu.pipeline_mode<synchronous>, transform_indices = @transform_2, window_bounds = array<i64: 1, 128>}, {pipeline_mode = #tpu.pipeline_mode<synchronous>, transform_indices = @transform_3, window_bounds = array<i64: 128, 64>}, {pipeline_mode = #tpu.pipeline_mode<synchronous>, transform_indices = @transform_4, window_bounds = array<i64: 1, 64>}, {pipeline_mode = #tpu.pipeline_mode<synchronous>, transform_indices = @transform_5, window_bounds = array<i64: 64, 8>}, {pipeline_mode = #tpu.pipeline_mode<synchronous>, transform_indices = @transform_6, window_bounds = array<i64: 1, 8>}, {transform_indices = @transform_7, window_bounds = array<i64: 8, 8>}]} {
    %c0 = arith.constant 0 : index
    %c0_0 = arith.constant 0 : index
    %0 = vector.load %arg1[%c0, %c0_0] : memref<8x32xf32, #tpu.memory_space<vmem>>, vector<8x32xf32>
    %c0_1 = arith.constant 0 : index
    %c0_2 = arith.constant 0 : index
    %1 = vector.load %arg2[%c0_1, %c0_2] : memref<32x128xf32, #tpu.memory_space<vmem>>, vector<32x128xf32>
    %cst = arith.constant dense<0.000000e+00> : vector<8x128xf32>
    %2 = tpu.matmul %0, %1, %cst {dimension_numbers = #tpu.dot_dimension_numbers<[1], [0], [0], [1], [0, 0, 1, 1], [], []>} : vector<8x32xf32>, vector<32x128xf32>, vector<8x128xf32> -> vector<8x128xf32>
    %c0_3 = arith.constant 0 : index
    %c0_4 = arith.constant 0 : index
    %3 = vector.load %arg3[%c0_3, %c0_4] : memref<1x128xf32, #tpu.memory_space<vmem>>, vector<1x128xf32>
    %4 = vector.broadcast %3 : vector<1x128xf32> to vector<8x128xf32>
    %5 = arith.addf %2, %4 : vector<8x128xf32>
    %cst_5 = arith.constant 0.000000e+00 : f32
    %6 = vector.broadcast %cst_5 : f32 to vector<8x128xf32>
    %7 = arith.maximumf %5, %6 : vector<8x128xf32>
    %c0_6 = arith.constant 0 : index
    %c0_7 = arith.constant 0 : index
    %8 = vector.load %arg4[%c0_6, %c0_7] : memref<128x64xf32, #tpu.memory_space<vmem>>, vector<128x64xf32>
    %cst_8 = arith.constant dense<0.000000e+00> : vector<8x64xf32>
    %9 = tpu.matmul %7, %8, %cst_8 {dimension_numbers = #tpu.dot_dimension_numbers<[1], [0], [0], [1], [0, 0, 1, 1], [], []>} : vector<8x128xf32>, vector<128x64xf32>, vector<8x64xf32> -> vector<8x64xf32>
    %c0_9 = arith.constant 0 : index
    %c0_10 = arith.constant 0 : index
    %10 = vector.load %arg5[%c0_9, %c0_10] : memref<1x64xf32, #tpu.memory_space<vmem>>, vector<1x64xf32>
    %11 = vector.broadcast %10 : vector<1x64xf32> to vector<8x64xf32>
    %12 = arith.addf %9, %11 : vector<8x64xf32>
    %cst_11 = arith.constant 0.000000e+00 : f32
    %13 = vector.broadcast %cst_11 : f32 to vector<8x64xf32>
    %14 = arith.maximumf %12, %13 : vector<8x64xf32>
    %c0_12 = arith.constant 0 : index
    %c0_13 = arith.constant 0 : index
    %15 = vector.load %arg6[%c0_12, %c0_13] : memref<64x8xf32, #tpu.memory_space<vmem>>, vector<64x8xf32>
    %cst_14 = arith.constant dense<0.000000e+00> : vector<8x8xf32>
    %16 = tpu.matmul %14, %15, %cst_14 {dimension_numbers = #tpu.dot_dimension_numbers<[1], [0], [0], [1], [0, 0, 1, 1], [], []>} : vector<8x64xf32>, vector<64x8xf32>, vector<8x8xf32> -> vector<8x8xf32>
    %c0_15 = arith.constant 0 : index
    %c0_16 = arith.constant 0 : index
    %17 = vector.load %arg7[%c0_15, %c0_16] : memref<1x8xf32, #tpu.memory_space<vmem>>, vector<1x8xf32>
    %18 = vector.broadcast %17 : vector<1x8xf32> to vector<8x8xf32>
    %19 = arith.addf %16, %18 : vector<8x8xf32>
    %c0_17 = arith.constant 0 : index
    %c0_18 = arith.constant 0 : index
    %20 = vector.load %arg8[%c0_17, %c0_18] : memref<8x8xf32, #tpu.memory_space<vmem>>, vector<8x8xf32>
    tpu.vector_store %arg8[%c0_17, %c0_18], %19 {strides = array<i32>} : memref<8x8xf32, #tpu.memory_space<vmem>>, vector<8x8xf32>,
    return
  }
  func.func @transform_0(%arg0: i32) -> (i32, i32) {
    %c0_i32 = arith.constant 0 : i32
    %c0_i32_0 = arith.constant 0 : i32
    return %arg0, %c0_i32 : i32, i32
  }
  func.func @transform_1(%arg0: i32) -> (i32, i32) {
    %c0_i32 = arith.constant 0 : i32
    %c0_i32_0 = arith.constant 0 : i32
    %c0_i32_1 = arith.constant 0 : i32
    return %c0_i32, %c0_i32_0 : i32, i32
  }
  func.func @transform_2(%arg0: i32) -> (i32, i32) {
    %c0_i32 = arith.constant 0 : i32
    %c0_i32_0 = arith.constant 0 : i32
    %c0_i32_1 = arith.constant 0 : i32
    return %c0_i32, %c0_i32_0 : i32, i32
  }
  func.func @transform_3(%arg0: i32) -> (i32, i32) {
    %c0_i32 = arith.constant 0 : i32
    %c0_i32_0 = arith.constant 0 : i32
    %c0_i32_1 = arith.constant 0 : i32
    return %c0_i32, %c0_i32_0 : i32, i32
  }
  func.func @transform_4(%arg0: i32) -> (i32, i32) {
    %c0_i32 = arith.constant 0 : i32
    %c0_i32_0 = arith.constant 0 : i32
    %c0_i32_1 = arith.constant 0 : i32
    return %c0_i32, %c0_i32_0 : i32, i32
  }
  func.func @transform_5(%arg0: i32) -> (i32, i32) {
    %c0_i32 = arith.constant 0 : i32
    %c0_i32_0 = arith.constant 0 : i32
    %c0_i32_1 = arith.constant 0 : i32
    return %c0_i32, %c0_i32_0 : i32, i32
  }
  func.func @transform_6(%arg0: i32) -> (i32, i32) {
    %c0_i32 = arith.constant 0 : i32
    %c0_i32_0 = arith.constant 0 : i32
    %c0_i32_1 = arith.constant 0 : i32
    return %c0_i32, %c0_i32_0 : i32, i32
  }
  func.func @transform_7(%arg0: i32) -> (i32, i32) {
    %c0_i32 = arith.constant 0 : i32
    %c0_i32_0 = arith.constant 0 : i32
    return %arg0, %c0_i32 : i32, i32
  }
}

</mosaic_0001>

<bundles_post_ra>
// kernel: tpu_custom_call.1
= control target key start
LH: loop header
LB: loop body
LE: loop exit
PB: predicated region body
PF: predicated region fallthrough
CT: control target
= control target key end

     0   :  { %vm36_vm0 = vcmask 261120   ;;  %s328_s0 = inlined_call_operand.vmem [shape: f32[8,32], index: 0, kind: input, shape index: {}]   ;;  %s329_s1 = inlined_call_operand.vmem [shape: f32[32,128], index: 1, kind: input, shape index: {}]   ;;  %s330_s2 = inlined_call_operand.vmem [shape: f32[1,128], index: 2, kind: input, shape index: {}]   ;;  %s331_s3 = inlined_call_operand.vmem [shape: f32[128,64], index: 3, kind: input, shape index: {}]   ;;  %s332_s4 = inlined_call_operand.vmem [shape: f32[1,64], index: 4, kind: input, shape index: {}]   ;;  %s333_s5 = inlined_call_operand.vmem [shape: f32[64,8], index: 5, kind: input, shape index: {}]   ;;  %s334_s6 = inlined_call_operand.vmem [shape: f32[1,8], index: 6, kind: input, shape index: {}]   ;;  %s335_s7 = inlined_call_operand.hbm [shape: f32[8,8], index: 7, kind: output, shape index: {}]  }
   0x1   :  { %v31_v0 = vld [vmem:[%s329_s1 + $0x18] sm:$0xff]  ;;  %v30_v1 = vld [vmem:[%s329_s1 + $0x10] sm:$0xff]  ;;  %v29_v3 = vld [vmem:[%s329_s1 + $0x8] sm:$0xff] }
   0x2   :  { %52 = vmatpush.msra.mxu0 %v31_v0  ;;  %v76_v2 = vld [vmem:[%s331_s3 + $0x78] sm:$0xff]  ;;  %v75_v4 = vld [vmem:[%s331_s3 + $0x70] sm:$0xff]  ;;  %v74_v5 = vld [vmem:[%s331_s3 + $0x68] sm:$0xff] }
   0x3   :  { %81 = vmatpush.msra.mxu1 %v76_v2  ;;  %v28_v6 = vld [vmem:[%s329_s1] sm:$0xff]  ;;  %v72_v9 = vld [vmem:[%s331_s3 + $0x58] sm:$0xff] }
   0x4   :  { %53 = vmatpush.msra.mxu0 %v30_v1  ;;  %v27_v7 = vld [vmem:[%s328_s0] sm:$0xff] }
   0x5   :  { %82 = vmatpush.msra.mxu1 %v75_v4  ;;  %v73_v8 = vld [vmem:[%s331_s3 + $0x60] sm:$0xff] }
   0x6   :  { %54 = vmatpush.msra.mxu0 %v29_v3 }
   0x7   :  { %83 = vmatpush.msra.mxu1 %v74_v5 }
   0x8   :  { %55 = vmatpush.msra.mxu0 %v28_v6 }
   0x9   :  { %12 = vsyncpa [#allocation3], 0  ;;  %156 = vmatmul.msk.f32.vlgmr.msra.gmra.mxu0 %vm36_vm0, %v27_v7  ;;  %84 = vmatpush.msra.mxu1 %v73_v8  ;;  %v71_v10 = vld [vmem:[%s331_s3 + $0x50] sm:$0xff]  ;;  %v70_v11 = vld [vmem:[%s331_s3 + $0x48] sm:$0xff]  ;;  %vm114_vm1 = vcmask 523264   ;;  %s188_s13 = smov [#allocation2]  }
   0xa   :  { %v69_v12 = vld [vmem:[%s331_s3 + $0x40] sm:$0xff]  ;;  %v68_v13 = vld [vmem:[%s331_s3 + $0x38] sm:$0xff]  ;;  %v67_v14 = vld [vmem:[%s331_s3 + $0x30] sm:$0xff]  ;;  %s145_s14 = sshll.u32 %s188_s13, 4  ;;  %vm138_vm2 = vcmask 64512   ;;  %s146_s14 = int_to_ptr.vmem [resolvable:$true] %s145_s14 }
   0xb   :  { %85 = vmatpush.msra.mxu1 %v72_v9  ;;  %v66_v15 = vld [vmem:[%s331_s3 + $0x28] sm:$0xff]  ;;  %v65_v16 = vld [vmem:[%s331_s3 + $0x20] sm:$0xff]  ;;  %v64_v17 = vld [vmem:[%s331_s3 + $0x18] sm:$0xff] }
   0xc   :  { %v63_v18 = vld [vmem:[%s331_s3 + $0x10] sm:$0xff]  ;;  %v62_v19 = vld [vmem:[%s331_s3 + $0x8] sm:$0xff]  ;;  %v61_v20 = vld [vmem:[%s331_s3] sm:$0xff] }
   0xd   :  { %86 = vmatpush.msra.mxu1 %v71_v10  ;;  %v109_v21 = vld [vmem:[%s333_s5 + $0x38] sm:$0xff]  ;;  %v108_v22 = vld [vmem:[%s333_s5 + $0x30] sm:$0xff]  ;;  %v107_v23 = vld [vmem:[%s333_s5 + $0x28] sm:$0xff] }
   0xe   :  { %126 = vmatpush.msra.mxu2 %v109_v21  ;;  %v106_v24 = vld [vmem:[%s333_s5 + $0x20] sm:$0xff]  ;;  %v105_v25 = vld [vmem:[%s333_s5 + $0x18] sm:$0xff]  ;;  %v104_v30 = vld [vmem:[%s333_s5 + $0x10] sm:$0xff] }
   0xf   :  { %87 = vmatpush.msra.mxu1 %v70_v11  ;;  %v159_v26 = vld [vmem:[%s330_s2] ss:$0 sm:$0xff]  ;;  %v103_v31 = vld [vmem:[%s333_s5 + $0x8] sm:$0xff] }
  0x10   :  { %127 = vmatpush.msra.mxu2 %v108_v22  ;;  %v102_v32 = vld [vmem:[%s333_s5] sm:$0xff]  ;;  %s147_s5 = sshll.u32 %s335_s7, 4  ;;  %s148_s5 = int_to_ptr.hbm [resolvable:$true] %s147_s5 }
  0x11   :  { %88 = vmatpush.msra.mxu1 %v69_v12  ;;  %v160_v33 = vld [vmem:[%s332_s4] ss:$0 sm:$0xff] }
  0x12   :  { %128 = vmatpush.msra.mxu2 %v107_v23  ;;  %v161_v37 = vld [vmem:[%s334_s6] ss:$0 sm:$0xff] }
  0x13   :  { %89 = vmatpush.msra.mxu1 %v68_v13 }
  0x14   :  { %129 = vmatpush.msra.mxu2 %v106_v24 }
  0x15   :  { %90 = vmatpush.msra.mxu1 %v67_v14 }
  0x16   :  { %130 = vmatpush.msra.mxu2 %v105_v25 }
  0x17   :  { %91 = vmatpush.msra.mxu1 %v66_v15 }
  0x18   :  { %131 = vmatpush.msra.mxu2 %v104_v30 }
  0x19   :  { %92 = vmatpush.msra.mxu1 %v65_v16 }
  0x1a   :  { %132 = vmatpush.msra.mxu2 %v103_v31 }
  0x1b   :  { %93 = vmatpush.msra.mxu1 %v64_v17 }
  0x1c   :  { %133 = vmatpush.msra.mxu2 %v102_v32 }
  0x1d   :  { %94 = vmatpush.msra.mxu1 %v63_v18 }
  0x1f   :  { %95 = vmatpush.msra.mxu1 %v62_v19 }
  0x21   :  { %96 = vmatpush.msra.mxu1 %v61_v20 }
  0x86   :  { %v57_v27 = vpop.f32.mrf.mxu0 }
  0x87   :  { %v58_v28 = vadd.f32 %v159_v26, %v57_v27 }
  0x89   :  { %v60_v29 = vmax.f32 %v58_v28, 0.0 }
  0x8b   :  { %97 = vmatmul.f32.vlgmr.msra.gmra.mxu1 %v60_v29 }
 0x108   :  { %v98_v34 = vpop.f32.mrf.mxu1 }
 0x109   :  { %v99_v35 = vadd.f32 %v160_v33, %v98_v34 }
 0x10b   :  { %v101_v36 = vmax.f32 %v99_v35, 0.0 }
 0x10d   :  { %157 = vmatmul.msk.f32.vlgmr.msra.gmra.mxu2 %vm114_vm1, %v101_v36 }
 0x190   :  { %v135_v38 = vpop.f32.mrf.mxu2 }
 0x191   :  { %v136_v39 = vadd.f32 %v161_v37, %v135_v38 }
 0x193   :  { %139 = vst.msk [vmem:[#allocation2] sm:$0xff] %vm138_vm2, %v136_v39 }
 0x194   :  { %150 = dma.vmem_to_hbm [thread:$0]  %s146_s14, 128, %s148_s5, [#allocation3]  }
 0x195   :  { %186 = dma.done.wait [#allocation3], 128  }
 0x196   :  { %187 = vsyncadd [#allocation3], 4294967168 }
 0x197   :  { %155 = vsyncpa [#allocation3], 1 }

</bundles_post_ra>
